<compile_context>
chip_gen: v5e
topology: v5e:2x2
jax: 0.10.0
libtpu: 0.0.40
codegen_flags: <defaults>
</compile_context>

<pallas_src>
import functools

import jax
import jax.numpy as jnp
from jax import lax
from jax.experimental import pallas as pl
from jax.experimental.pallas import tpu as pltpu


def _round_up(x, m):
    return ((x + m - 1) // m) * m


# ----------------------------------------------------------------------------
# Pallas kernel: logits tile + online logsumexp / argmax across vocab tiles.
# ----------------------------------------------------------------------------
def _lm_loss_kernel(x_ref, w_ref, b_ref, tgt_ref, out_ref,
                    m_sc, l_sc, tl_sc, idx_sc,
                    *, n_tokens, v_total, tile_m, tile_v):
    i = pl.program_id(0)          # token-tile index (parallel)
    j = pl.program_id(1)          # vocab-tile index (reduction, innermost)

    @pl.when(j == 0)
    def _init():
        m_sc[...] = jnp.full_like(m_sc, -jnp.inf)     # running row max
        l_sc[...] = jnp.zeros_like(l_sc)              # running sum of exp
        tl_sc[...] = jnp.zeros_like(tl_sc)            # target-class logit
        idx_sc[...] = jnp.zeros_like(idx_sc)          # running argmax column

    # (tile_m, tile_v) logits tile; bf16 MXU matmul, f32 accumulation.
    logits = jnp.dot(x_ref[...], w_ref[...],
                     preferred_element_type=jnp.float32) + b_ref[...]

    # global vocab-column index for this tile, lane-shaped (1, tile_v)
    col = lax.broadcasted_iota(jnp.int32, (1, tile_v), 1) + j * tile_v
    if v_total % tile_v != 0:
        # mask out-of-range vocab columns of the ragged last vocab tile
        logits = jnp.where(col < v_total, logits, -jnp.inf)

    tgt = tgt_ref[...]                                # (tile_m, 1) int32

    # target-class logit (exactly one vocab tile contains the target column)
    tl_sc[...] += jnp.sum(jnp.where(col == tgt, logits, 0.0),
                          axis=-1, keepdims=True)

    # tile-local max and the min column index attaining it (first-hit ties,
    # matching torch.argmax / jnp.argmax)
    tile_max = jnp.max(logits, axis=-1, keepdims=True)
    tile_idx = jnp.min(jnp.where(logits == tile_max, col, jnp.int32(2 ** 30)),
                       axis=-1, keepdims=True)

    m_old = m_sc[...]
    m_new = jnp.maximum(m_old, tile_max)
    l_sc[...] = (l_sc[...] * jnp.exp(m_old - m_new)
                 + jnp.sum(jnp.exp(logits - m_new), axis=-1, keepdims=True))
    # earlier vocab tiles win ties -> only replace on strict improvement
    idx_sc[...] = jnp.where(tile_max > m_old, tile_idx, idx_sc[...])
    m_sc[...] = m_new

    @pl.when(j == pl.num_programs(1) - 1)
    def _finalize():
        row = lax.broadcasted_iota(jnp.int32, (tile_m, 1), 0) + i * tile_m
        valid = (row < n_tokens) & (tgt > 0)          # (tile_m, 1) bool
        nll = (m_sc[...] + jnp.log(l_sc[...])) - tl_sc[...]
        correct = (idx_sc[...] == tgt).astype(jnp.float32)
        num = jnp.sum(jnp.where(valid, nll, 0.0))
        cor = jnp.sum(jnp.where(valid, correct, 0.0))
        den = jnp.sum(valid.astype(jnp.float32))
        # lane-dense, (8,128)-aligned output block; lanes 0/1/2 carry the sums
        lane = lax.broadcasted_iota(jnp.int32, (1, 8, 128), 2)
        out_ref[...] = (jnp.where(lane == 0, num, 0.0)
                        + jnp.where(lane == 1, cor, 0.0)
                        + jnp.where(lane == 2, den, 0.0))


def lm_target_pallas(memory_bank, tgt, seg, w, b, *, tile_m=256, tile_v=1024):
    """LM-style target loss.  Returns (loss, correct, denominator)."""
    del seg  # UER LmTarget masks by tgt > 0; seg is unused in the loss.
    B, S, H = memory_bank.shape
    V = w.shape[1]
    N = B * S

    x = memory_bank.reshape(N, H).astype(jnp.bfloat16)
    wq = w.astype(jnp.bfloat16)
    bq = b.reshape(1, V).astype(jnp.float32)
    t = tgt.reshape(N, 1).astype(jnp.int32)

    tile_m = min(tile_m, _round_up(N, 16))    # bf16 sublane packing (16)
    tile_v = min(tile_v, _round_up(V, 128))   # lane multiple of 128
    grid_m = pl.cdiv(N, tile_m)
    grid_v = pl.cdiv(V, tile_v)

    kernel = functools.partial(_lm_loss_kernel, n_tokens=N, v_total=V,
                               tile_m=tile_m, tile_v=tile_v)

    partial_sums = pl.pallas_call(
        kernel,
        out_shape=jax.ShapeDtypeStruct((grid_m, 8, 128), jnp.float32),
        grid_spec=pltpu.PrefetchScalarGridSpec(
            num_scalar_prefetch=0,
            grid=(grid_m, grid_v),
            in_specs=[
                pl.BlockSpec((tile_m, H), lambda i, j: (i, 0)),    # x tile
                pl.BlockSpec((H, tile_v), lambda i, j: (0, j)),    # weight V-tile
                pl.BlockSpec((1, tile_v), lambda i, j: (0, j)),    # bias V-tile
                pl.BlockSpec((tile_m, 1), lambda i, j: (i, 0)),    # targets tile
            ],
            out_specs=pl.BlockSpec((1, 8, 128), lambda i, j: (i, 0, 0)),
            scratch_shapes=[
                pltpu.VMEM((tile_m, 1), jnp.float32),   # running max
                pltpu.VMEM((tile_m, 1), jnp.float32),   # running sum exp
                pltpu.VMEM((tile_m, 1), jnp.float32),   # target logit
                pltpu.VMEM((tile_m, 1), jnp.int32),     # running argmax
            ],
        ),
        compiler_params=pltpu.CompilerParams(
            dimension_semantics=("parallel", "arbitrary"),
        ),
    )(x, wq, bq, t)

    sums = jnp.sum(partial_sums[:, 0, :], axis=0)
    denominator = sums[2] + jnp.float32(1e-6)
    loss = sums[0] / denominator
    correct = sums[1]
    return loss, correct, denominator


# ----------------------------------------------------------------------------
# Faithful re-implementation of uer/targets/target.py::Target (dispatcher).
# ----------------------------------------------------------------------------
class Target:
    def __init__(self):
        self.target_list = []
        self.target_name_list = []
        self.loss_info = {}

    def update(self, target, target_name):
        self.target_list.append(target.forward)
        self.target_name_list.append(target_name)
        # TODO(synk): nn.Module `_modules` dict merging has no tensor/Pallas
        # equivalent; parameters live on the registered sub-target objects.

    def forward(self, memory_bank, tgt, seg):
        self.loss_info = {}
        for i, target in enumerate(self.target_list):
            if len(self.target_list) > 1:
                self.loss_info[self.target_name_list[i]] = target(
                    memory_bank, tgt[self.target_name_list[i]], seg)
            else:
                self.loss_info = target(memory_bank, tgt, seg)
        return self.loss_info


class LmTargetPallas:
    """Representative sub-target: hidden->vocab projection + masked CE loss."""

    def __init__(self, hidden_size, vocab_size, key):
        kw, kb = jax.random.split(key)
        self.w = (jax.random.normal(kw, (hidden_size, vocab_size), jnp.float32)
                  * (1.0 / jnp.sqrt(hidden_size)))
        self.b = jax.random.normal(kb, (vocab_size,), jnp.float32) * 0.02
        self._fn = jax.jit(functools.partial(lm_target_pallas, w=self.w, b=self.b))

    def forward(self, memory_bank, tgt, seg):
        return self._fn(memory_bank, tgt, seg)


# ----------------------------------------------------------------------------
# Reference (pure JAX, same bf16 matmul precision) for a sanity check.
# ----------------------------------------------------------------------------
def _reference(memory_bank, tgt, w, b):
    B, S, H = memory_bank.shape
    x = memory_bank.reshape(-1, H).astype(jnp.bfloat16)
    t = tgt.reshape(-1).astype(jnp.int32)
    logits = jnp.dot(x, w.astype(jnp.bfloat16),
                     preferred_element_type=jnp.float32) + b
    logp = jax.nn.log_softmax(logits, axis=-1)
    nll = -jnp.take_along_axis(logp, t[:, None], axis=-1)[:, 0]
    mask = (t > 0).astype(jnp.float32)
    den = jnp.sum(mask) + 1e-6
    loss = jnp.sum(mask * nll) / den
    correct = jnp.sum(mask * (jnp.argmax(logits, axis=-1) == t).astype(jnp.float32))
    return loss, correct, den


if __name__ == "__main__":
    B, S, H, V = 2, 8, 32, 128
    key = jax.random.PRNGKey(0)
    k_mb, k_tgt, k_seg, k_par = jax.random.split(key, 4)

    memory_bank = jax.random.normal(k_mb, (B, S, H), jnp.float32)
    tgt = jax.random.randint(k_tgt, (B, S), 0, V, jnp.int32)
    seg = (jax.random.uniform(k_seg, (B, S)) > 0.2).astype(jnp.int32)
    tgt = tgt * seg  # some positions masked out (tgt == 0)

    model = Target()
    model.update(LmTargetPallas(H, V, k_par), "lm")

    loss, correct, denominator = model.forward(memory_bank, tgt, seg)
    jax.block_until_ready((loss, correct, denominator))

    # reference check using the registered sub-target's parameters
    sub = model.target_list[0].__self__
    ref_loss, ref_correct, ref_den = _reference(memory_bank, tgt, sub.w, sub.b)

    assert jnp.allclose(loss, ref_loss, rtol=2e-3, atol=2e-3), (loss, ref_loss)
    assert float(jnp.abs(correct - ref_correct)) < 0.5, (correct, ref_correct)
    assert jnp.allclose(denominator, ref_den, rtol=1e-5), (denominator, ref_den)

    print("KERNEL_OK")
</pallas_src>

<mosaic_0001>
module attributes {stable_mosaic.version = 11 : i64} {
  func.func @_lm_loss_kernel(%arg0: i32, %arg1: i32, %arg2: memref<16x32xbf16, #tpu.memory_space<vmem>>, %arg3: memref<32x128xbf16, #tpu.memory_space<vmem>>, %arg4: memref<1x128xf32, #tpu.memory_space<vmem>>, %arg5: memref<16x1xi32, #tpu.memory_space<vmem>>, %arg6: memref<1x8x128xf32, #tpu.memory_space<vmem>>, %arg7: memref<16x1xf32, #tpu.memory_space<vmem>>, %arg8: memref<16x1xf32, #tpu.memory_space<vmem>>, %arg9: memref<16x1xf32, #tpu.memory_space<vmem>>, %arg10: memref<16x1xi32, #tpu.memory_space<vmem>>) attributes {dimension_semantics = [#tpu.dimension_semantics<parallel>, #tpu.dimension_semantics<arbitrary>], iteration_bounds = array<i64: 1, 1>, scalar_prefetch = 0 : i64, scratch_operands = 4 : i64, tpu.core_type = #tpu.core_type<tc>, window_params = [{transform_indices = @transform_0, window_bounds = array<i64: 16, 32>}, {transform_indices = @transform_1, window_bounds = array<i64: 32, 128>}, {transform_indices = @transform_2, window_bounds = array<i64: 1, 128>}, {transform_indices = @transform_3, window_bounds = array<i64: 16, 1>}, {transform_indices = @transform_4, window_bounds = array<i64: 1, 8, 128>}]} {
    %c0_i32 = arith.constant 0 : i32
    %0 = arith.cmpi eq, %arg1, %c0_i32 : i32
    %1 = arith.extui %0 : i1 to i32
    %c0_i32_0 = arith.constant 0 : i32
    %2 = arith.cmpi ne, %1, %c0_i32_0 : i32
    scf.if %2 {
      %cst_31 = arith.constant 0xFF800000 : f32
      %55 = vector.broadcast %cst_31 : f32 to vector<16x1xf32>
      %c0_32 = arith.constant 0 : index
      %c0_33 = arith.constant 0 : index
      %56 = vector.load %arg7[%c0_32, %c0_33] : memref<16x1xf32, #tpu.memory_space<vmem>>, vector<16x1xf32>
      tpu.vector_store %arg7[%c0_32, %c0_33], %55 {strides = array<i32>} : memref<16x1xf32, #tpu.memory_space<vmem>>, vector<16x1xf32>,
      %cst_34 = arith.constant 0.000000e+00 : f32
      %57 = vector.broadcast %cst_34 : f32 to vector<16x1xf32>
      %c0_35 = arith.constant 0 : index
      %c0_36 = arith.constant 0 : index
      %58 = vector.load %arg8[%c0_35, %c0_36] : memref<16x1xf32, #tpu.memory_space<vmem>>, vector<16x1xf32>
      tpu.vector_store %arg8[%c0_35, %c0_36], %57 {strides = array<i32>} : memref<16x1xf32, #tpu.memory_space<vmem>>, vector<16x1xf32>,
      %cst_37 = arith.constant 0.000000e+00 : f32
      %59 = vector.broadcast %cst_37 : f32 to vector<16x1xf32>
      %c0_38 = arith.constant 0 : index
      %c0_39 = arith.constant 0 : index
      %60 = vector.load %arg9[%c0_38, %c0_39] : memref<16x1xf32, #tpu.memory_space<vmem>>, vector<16x1xf32>
      tpu.vector_store %arg9[%c0_38, %c0_39], %59 {strides = array<i32>} : memref<16x1xf32, #tpu.memory_space<vmem>>, vector<16x1xf32>,
      %c0_i32_40 = arith.constant 0 : i32
      %61 = vector.broadcast %c0_i32_40 : i32 to vector<16x1xi32>
      %c0_41 = arith.constant 0 : index
      %c0_42 = arith.constant 0 : index
      %62 = vector.load %arg10[%c0_41, %c0_42] : memref<16x1xi32, #tpu.memory_space<vmem>>, vector<16x1xi32>
      tpu.vector_store %arg10[%c0_41, %c0_42], %61 {strides = array<i32>} : memref<16x1xi32, #tpu.memory_space<vmem>>, vector<16x1xi32>,
    } else {
    }
    %c0 = arith.constant 0 : index
    %c0_1 = arith.constant 0 : index
    %3 = vector.load %arg2[%c0, %c0_1] : memref<16x32xbf16, #tpu.memory_space<vmem>>, vector<16x32xbf16>
    %c0_2 = arith.constant 0 : index
    %c0_3 = arith.constant 0 : index
    %4 = vector.load %arg3[%c0_2, %c0_3] : memref<32x128xbf16, #tpu.memory_space<vmem>>, vector<32x128xbf16>
    %cst = arith.constant dense<0.000000e+00> : vector<16x128xf32>
    %5 = tpu.matmul %3, %4, %cst {dimension_numbers = #tpu.dot_dimension_numbers<[1], [0], [0], [1], [0, 0, 1, 1], [], []>} : vector<16x32xbf16>, vector<32x128xbf16>, vector<16x128xf32> -> vector<16x128xf32>
    %c0_4 = arith.constant 0 : index
    %c0_5 = arith.constant 0 : index
    %6 = vector.load %arg4[%c0_4, %c0_5] : memref<1x128xf32, #tpu.memory_space<vmem>>, vector<1x128xf32>
    %7 = vector.broadcast %6 : vector<1x128xf32> to vector<16x128xf32>
    %8 = arith.addf %5, %7 : vector<16x128xf32>
    %9 = tpu.iota {dimensions = array<i32: 1>} : vector<1x128xi32>
    %c128_i32 = arith.constant 128 : i32
    %10 = arith.muli %arg1, %c128_i32 : i32
    %11 = vector.broadcast %10 : i32 to vector<1x128xi32>
    %12 = arith.addi %9, %11 : vector<1x128xi32>
    %c0_6 = arith.constant 0 : index
    %c0_7 = arith.constant 0 : index
    %13 = vector.load %arg5[%c0_6, %c0_7] : memref<16x1xi32, #tpu.memory_space<vmem>>, vector<16x1xi32>
    %c0_8 = arith.constant 0 : index
    %c0_9 = arith.constant 0 : index
    %14 = vector.load %arg9[%c0_8, %c0_9] : memref<16x1xf32, #tpu.memory_space<vmem>>, vector<16x1xf32>
    %15 = vector.broadcast %12 : vector<1x128xi32> to vector<16x128xi32>
    %16 = vector.broadcast %13 : vector<16x1xi32> to vector<16x128xi32>
    %17 = arith.cmpi eq, %15, %16 : vector<16x128xi32>
    %cst_10 = arith.constant 0.000000e+00 : f32
    %18 = vector.broadcast %cst_10 : f32 to vector<16x128xf32>
    %19 = arith.select %17, %8, %18 : vector<16x128xi1>, vector<16x128xf32>
    %cst_11 = arith.constant dense<0.000000e+00> : vector<16xf32>
    %20 = vector.multi_reduction <add>, %19, %cst_11 [1] : vector<16x128xf32> to vector<16xf32>
    %21 = vector.shape_cast %20 : vector<16xf32> to vector<16x1xf32>
    %22 = arith.addf %14, %21 : vector<16x1xf32>
    %c0_12 = arith.constant 0 : index
    %c0_13 = arith.constant 0 : index
    %23 = vector.load %arg9[%c0_12, %c0_13] : memref<16x1xf32, #tpu.memory_space<vmem>>, vector<16x1xf32>
    tpu.vector_store %arg9[%c0_12, %c0_13], %22 {strides = array<i32>} : memref<16x1xf32, #tpu.memory_space<vmem>>, vector<16x1xf32>,
    %cst_14 = arith.constant dense<0xFF800000> : vector<16xf32>
    %24 = vector.multi_reduction <maximumf>, %8, %cst_14 [1] : vector<16x128xf32> to vector<16xf32>
    %25 = vector.shape_cast %24 : vector<16xf32> to vector<16x1xf32>
    %26 = vector.broadcast %25 : vector<16x1xf32> to vector<16x128xf32>
    %27 = arith.cmpf oeq, %8, %26 : vector<16x128xf32>
    %c1073741824_i32 = arith.constant 1073741824 : i32
    %28 = vector.shape_cast %12 : vector<1x128xi32> to vector<1x128xi32>
    %29 = vector.broadcast %28 : vector<1x128xi32> to vector<16x128xi32>
    %30 = vector.broadcast %c1073741824_i32 : i32 to vector<16x128xi32>
    %31 = arith.select %27, %29, %30 : vector<16x128xi1>, vector<16x128xi32>
    %cst_15 = arith.constant dense<2147483647> : vector<16xi32>
    %32 = vector.multi_reduction <minsi>, %31, %cst_15 [1] : vector<16x128xi32> to vector<16xi32>
    %33 = vector.shape_cast %32 : vector<16xi32> to vector<16x1xi32>
    %c0_16 = arith.constant 0 : index
    %c0_17 = arith.constant 0 : index
    %34 = vector.load %arg7[%c0_16, %c0_17] : memref<16x1xf32, #tpu.memory_space<vmem>>, vector<16x1xf32>
    %35 = arith.maximumf %34, %25 : vector<16x1xf32>
    %c0_18 = arith.constant 0 : index
    %c0_19 = arith.constant 0 : index
    %36 = vector.load %arg8[%c0_18, %c0_19] : memref<16x1xf32, #tpu.memory_space<vmem>>, vector<16x1xf32>
    %37 = arith.subf %34, %35 : vector<16x1xf32>
    %38 = math.exp %37 : vector<16x1xf32>
    %39 = arith.mulf %36, %38 : vector<16x1xf32>
    %40 = vector.broadcast %35 : vector<16x1xf32> to vector<16x128xf32>
    %41 = arith.subf %8, %40 : vector<16x128xf32>
    %42 = math.exp %41 : vector<16x128xf32>
    %cst_20 = arith.constant dense<0.000000e+00> : vector<16xf32>
    %43 = vector.multi_reduction <add>, %42, %cst_20 [1] : vector<16x128xf32> to vector<16xf32>
    %44 = vector.shape_cast %43 : vector<16xf32> to vector<16x1xf32>
    %45 = arith.addf %39, %44 : vector<16x1xf32>
    %c0_21 = arith.constant 0 : index
    %c0_22 = arith.constant 0 : index
    %46 = vector.load %arg8[%c0_21, %c0_22] : memref<16x1xf32, #tpu.memory_space<vmem>>, vector<16x1xf32>
    tpu.vector_store %arg8[%c0_21, %c0_22], %45 {strides = array<i32>} : memref<16x1xf32, #tpu.memory_space<vmem>>, vector<16x1xf32>,
    %47 = arith.cmpf ogt, %25, %34 : vector<16x1xf32>
    %c0_23 = arith.constant 0 : index
    %c0_24 = arith.constant 0 : index
    %48 = vector.load %arg10[%c0_23, %c0_24] : memref<16x1xi32, #tpu.memory_space<vmem>>, vector<16x1xi32>
    %49 = arith.select %47, %33, %48 : vector<16x1xi1>, vector<16x1xi32>
    %c0_25 = arith.constant 0 : index
    %c0_26 = arith.constant 0 : index
    %50 = vector.load %arg10[%c0_25, %c0_26] : memref<16x1xi32, #tpu.memory_space<vmem>>, vector<16x1xi32>
    tpu.vector_store %arg10[%c0_25, %c0_26], %49 {strides = array<i32>} : memref<16x1xi32, #tpu.memory_space<vmem>>, vector<16x1xi32>,
    %c0_27 = arith.constant 0 : index
    %c0_28 = arith.constant 0 : index
    %51 = vector.load %arg7[%c0_27, %c0_28] : memref<16x1xf32, #tpu.memory_space<vmem>>, vector<16x1xf32>
    tpu.vector_store %arg7[%c0_27, %c0_28], %35 {strides = array<i32>} : memref<16x1xf32, #tpu.memory_space<vmem>>, vector<16x1xf32>,
    %c0_i32_29 = arith.constant 0 : i32
    %52 = arith.cmpi eq, %arg1, %c0_i32_29 : i32
    %53 = arith.extui %52 : i1 to i32
    %c0_i32_30 = arith.constant 0 : i32
    %54 = arith.cmpi ne, %53, %c0_i32_30 : i32
    scf.if %54 {
      %55 = tpu.iota {dimensions = array<i32: 0>} : vector<16x1xi32>
      %c16_i32 = arith.constant 16 : i32
      %56 = arith.muli %arg0, %c16_i32 : i32
      %57 = vector.broadcast %56 : i32 to vector<16x1xi32>
      %58 = arith.addi %55, %57 : vector<16x1xi32>
      %c16_i32_31 = arith.constant 16 : i32
      %59 = vector.broadcast %c16_i32_31 : i32 to vector<16x1xi32>
      %60 = arith.cmpi slt, %58, %59 : vector<16x1xi32>
      %c0_i32_32 = arith.constant 0 : i32
      %61 = vector.broadcast %c0_i32_32 : i32 to vector<16x1xi32>
      %62 = arith.cmpi sgt, %13, %61 : vector<16x1xi32>
      %63 = arith.andi %60, %62 : vector<16x1xi1>
      %c0_33 = arith.constant 0 : index
      %c0_34 = arith.constant 0 : index
      %64 = vector.load %arg7[%c0_33, %c0_34] : memref<16x1xf32, #tpu.memory_space<vmem>>, vector<16x1xf32>
      %c0_35 = arith.constant 0 : index
      %c0_36 = arith.constant 0 : index
      %65 = vector.load %arg8[%c0_35, %c0_36] : memref<16x1xf32, #tpu.memory_space<vmem>>, vector<16x1xf32>
      %66 = math.log %65 : vector<16x1xf32>
      %67 = arith.addf %64, %66 : vector<16x1xf32>
      %c0_37 = arith.constant 0 : index
      %c0_38 = arith.constant 0 : index
      %68 = vector.load %arg9[%c0_37, %c0_38] : memref<16x1xf32, #tpu.memory_space<vmem>>, vector<16x1xf32>
      %69 = arith.subf %67, %68 : vector<16x1xf32>
      %c0_39 = arith.constant 0 : index
      %c0_40 = arith.constant 0 : index
      %70 = vector.load %arg10[%c0_39, %c0_40] : memref<16x1xi32, #tpu.memory_space<vmem>>, vector<16x1xi32>
      %71 = arith.cmpi eq, %70, %13 : vector<16x1xi32>
      %72 = arith.extui %71 : vector<16x1xi1> to vector<16x1xi32>
      %73 = arith.sitofp %72 : vector<16x1xi32> to vector<16x1xf32>
      %cst_41 = arith.constant 0.000000e+00 : f32
      %74 = vector.broadcast %cst_41 : f32 to vector<16x1xf32>
      %75 = arith.select %63, %69, %74 : vector<16x1xi1>, vector<16x1xf32>
      %76 = vector.shape_cast %75 : vector<16x1xf32> to vector<1x16x1xf32>
      %cst_42 = arith.constant dense<0.000000e+00> : vector<1xf32>
      %77 = vector.multi_reduction <add>, %76, %cst_42 [1, 2] : vector<1x16x1xf32> to vector<1xf32>
      %78 = vector.shape_cast %77 : vector<1xf32> to vector<1x1x1xf32>
      %79 = vector.extract %78[0, 0, 0] : f32 from vector<1x1x1xf32>
      %cst_43 = arith.constant 0.000000e+00 : f32
      %80 = vector.broadcast %cst_43 : f32 to vector<16x1xf32>
      %81 = arith.select %63, %73, %80 : vector<16x1xi1>, vector<16x1xf32>
      %82 = vector.shape_cast %81 : vector<16x1xf32> to vector<1x16x1xf32>
      %cst_44 = arith.constant dense<0.000000e+00> : vector<1xf32>
      %83 = vector.multi_reduction <add>, %82, %cst_44 [1, 2] : vector<1x16x1xf32> to vector<1xf32>
      %84 = vector.shape_cast %83 : vector<1xf32> to vector<1x1x1xf32>
      %85 = vector.extract %84[0, 0, 0] : f32 from vector<1x1x1xf32>
      %86 = arith.extui %63 : vector<16x1xi1> to vector<16x1xi32>
      %87 = arith.sitofp %86 : vector<16x1xi32> to vector<16x1xf32>
      %88 = vector.shape_cast %87 : vector<16x1xf32> to vector<1x16x1xf32>
      %cst_45 = arith.constant dense<0.000000e+00> : vector<1xf32>
      %89 = vector.multi_reduction <add>, %88, %cst_45 [1, 2] : vector<1x16x1xf32> to vector<1xf32>
      %90 = vector.shape_cast %89 : vector<1xf32> to vector<1x1x1xf32>
      %91 = vector.extract %90[0, 0, 0] : f32 from vector<1x1x1xf32>
      %92 = tpu.iota {dimensions = array<i32: 2>} : vector<1x8x128xi32>
      %c0_i32_46 = arith.constant 0 : i32
      %93 = vector.broadcast %c0_i32_46 : i32 to vector<1x8x128xi32>
      %94 = arith.cmpi eq, %92, %93 : vector<1x8x128xi32>
      %cst_47 = arith.constant 0.000000e+00 : f32
      %95 = vector.broadcast %79 : f32 to vector<1x8x128xf32>
      %96 = vector.broadcast %cst_47 : f32 to vector<1x8x128xf32>
      %97 = arith.select %94, %95, %96 : vector<1x8x128xi1>, vector<1x8x128xf32>
      %c1_i32 = arith.constant 1 : i32
      %98 = vector.broadcast %c1_i32 : i32 to vector<1x8x128xi32>
      %99 = arith.cmpi eq, %92, %98 : vector<1x8x128xi32>
      %cst_48 = arith.constant 0.000000e+00 : f32
      %100 = vector.broadcast %85 : f32 to vector<1x8x128xf32>
      %101 = vector.broadcast %cst_48 : f32 to vector<1x8x128xf32>
      %102 = arith.select %99, %100, %101 : vector<1x8x128xi1>, vector<1x8x128xf32>
      %103 = arith.addf %97, %102 : vector<1x8x128xf32>
      %c2_i32 = arith.constant 2 : i32
      %104 = vector.broadcast %c2_i32 : i32 to vector<1x8x128xi32>
      %105 = arith.cmpi eq, %92, %104 : vector<1x8x128xi32>
      %cst_49 = arith.constant 0.000000e+00 : f32
      %106 = vector.broadcast %91 : f32 to vector<1x8x128xf32>
      %107 = vector.broadcast %cst_49 : f32 to vector<1x8x128xf32>
      %108 = arith.select %105, %106, %107 : vector<1x8x128xi1>, vector<1x8x128xf32>
      %109 = arith.addf %103, %108 : vector<1x8x128xf32>
      %c0_50 = arith.constant 0 : index
      %c0_51 = arith.constant 0 : index
      %c0_52 = arith.constant 0 : index
      %110 = vector.load %arg6[%c0_50, %c0_51, %c0_52] : memref<1x8x128xf32, #tpu.memory_space<vmem>>, vector<1x8x128xf32>
      tpu.vector_store %arg6[%c0_50, %c0_51, %c0_52], %109 {strides = array<i32>} : memref<1x8x128xf32, #tpu.memory_space<vmem>>, vector<1x8x128xf32>,
    } else {
    }
    return
  }
  func.func @transform_0(%arg0: i32, %arg1: i32) -> (i32, i32) {
    %c0_i32 = arith.constant 0 : i32
    %c0_i32_0 = arith.constant 0 : i32
    return %arg0, %c0_i32 : i32, i32
  }
  func.func @transform_1(%arg0: i32, %arg1: i32) -> (i32, i32) {
    %c0_i32 = arith.constant 0 : i32
    %c0_i32_0 = arith.constant 0 : i32
    return %c0_i32, %arg1 : i32, i32
  }
  func.func @transform_2(%arg0: i32, %arg1: i32) -> (i32, i32) {
    %c0_i32 = arith.constant 0 : i32
    %c0_i32_0 = arith.constant 0 : i32
    return %c0_i32, %arg1 : i32, i32
  }
  func.func @transform_3(%arg0: i32, %arg1: i32) -> (i32, i32) {
    %c0_i32 = arith.constant 0 : i32
    %c0_i32_0 = arith.constant 0 : i32
    return %arg0, %c0_i32 : i32, i32
  }
  func.func @transform_4(%arg0: i32, %arg1: i32) -> (i32, i32, i32) {
    %c0_i32 = arith.constant 0 : i32
    %c0_i32_0 = arith.constant 0 : i32
    %c0_i32_1 = arith.constant 0 : i32
    return %arg0, %c0_i32, %c0_i32_0 : i32, i32, i32
  }
}

</mosaic_0001>

<bundles_post_ra>
// kernel: lm_target_pallas.1
= control target key start
LH: loop header
LB: loop body
LE: loop exit
PB: predicated region body
PF: predicated region fallthrough
CT: control target
= control target key end

     0   :  { %vm58_vm0 = vcmask 261120   ;;  %vm22_vm1 = vcmask 7168   ;;  %v330_v3 = vmov 0   ;;  %v331_v6 = vmov -inf   ;;  %s478_s1 = inlined_call_operand.vmem [shape: bf16[32,128], index: 1, kind: input, shape index: {}]   ;;  %s479_s2 = inlined_call_operand.vmem [shape: f32[1,128], index: 2, kind: input, shape index: {}]   ;;  %s480_s0 = inlined_call_operand.vmem [shape: bf16[16,32], index: 0, kind: input, shape index: {}]   ;;  %s481_s3 = inlined_call_operand.vmem [shape: s32[16,1], index: 3, kind: input, shape index: {}]   ;;  %s482_s4 = inlined_call_operand.vmem [shape: f32[1,8,128], index: 4, kind: output, shape index: {}]  }
   0x1   :  { %v305_v0 = vld [vmem:[%s478_s1 + $0x8] sm:$0xff]  ;;  %v304_v1 = vld [vmem:[%s478_s1] sm:$0xff]  ;;  %316 = vset.pattern.permute.xlu0 %v330_v3  ;;  %29 = vst.msk [vmem:[#allocation5] sm:$0xff] %vm22_vm1, %v330_v3  ;;  %315 = vset.pattern.permute.xlu1 %v330_v3  ;;  %v332_v11 = vmov 0.0   ;;  %v76_v12 = vlaneseq }
   0x2   :  { %68 = vmatpush.bf16.msra.mxu0 %v305_v0  ;;  %v303_v2 = vld [vmem:[%s480_s0] sm:$0xff]  ;;  %30 = vst.msk [vmem:[#allocation5 + $0x8] sm:$0xff] %vm22_vm1, %v330_v3  ;;  %v425_v28 = vld [vmem:[%s481_s3 + $0x8] sm:$0xff] }
   0x3   :  { %v317_v4 = vld [vmem:[%s479_s2] ss:$0 sm:$0xff]  ;;  %23 = vst.msk [vmem:[#allocation2] sm:$0xff] %vm22_vm1, %v331_v6  ;;  %v396_v14 = vand.u32 127, %v76_v12  ;;  %vm201_vm12 = vcmp.gt.s32.totalorder %v425_v28, 0 }
   0x4   :  { %24 = vst.msk [vmem:[#allocation2 + $0x8] sm:$0xff] %vm22_vm1, %v331_v6  ;;  %v383_v10 = vld [vmem:[%s481_s3] sm:$0xff] }
   0x5   :  { %25 = vst.msk [vmem:[#allocation3] sm:$0xff] %vm22_vm1, %v332_v11  ;;  %vm200_vm11 = vcmp.gt.s32.totalorder %v383_v10, 0  ;;  %vm270_vm14 = vcmp.eq.s32.totalorder %v396_v14, 0  ;;  %vm273_vm15 = vcmp.eq.s32.totalorder %v396_v14, 1 }
   0x6   :  { %69 = vmatpush.bf16.msra.mxu0 %v304_v1  ;;  %26 = vst.msk [vmem:[#allocation3 + $0x8] sm:$0xff] %vm22_vm1, %v332_v11 }
   0x7   :  { %27 = vst.msk [vmem:[#allocation4] sm:$0xff] %vm22_vm1, %v332_v11 }
   0x8   :  { %28 = vst.msk [vmem:[#allocation4 + $0x8] sm:$0xff] %vm22_vm1, %v332_v11  ;;  %v180_v1 = vld [vmem:[#allocation5] sm:$0xff] }
   0x9   :  { %298 = vmatmul.msk.bf16.vlgmr.msra.gmra.mxu0 %vm58_vm0, %v303_v2  ;;  %vm277_vm0 = vcmp.eq.s32.totalorder %v396_v14, 2 }
   0xa   :  { %v394_v13 = vld [vmem:[#allocation2] sm:$0xff] }
   0xb   :  { %v409_v21 = vld [vmem:[#allocation2 + $0x8] sm:$0xff] }
   0xc   :  { %v144_v52 = vld [vmem:[#allocation3] sm:$0xff] }
   0xd   :  { %v145_v57 = vld [vmem:[#allocation3 + $0x8] sm:$0xff] }
  0x86   :  { %v71_v5 = vpop.f32.mrf.mxu0 }
  0x87   :  { %v373_v7 = vadd.f32 %v317_v4, %v71_v5 }
  0x89   :  { %104 = vmax.xlane.f32.xlu0 %v373_v7 }
  0x8e   :  { %v73_v8 = vpop.f32.mrf.mxu0 }
  0x8f   :  { %v377_v9 = vadd.f32 %v317_v4, %v73_v8  ;;  %v181_v8 = vld [vmem:[#allocation5 + $0x8] sm:$0xff] }
  0x91   :  { %106 = vmax.xlane.f32.xlu0 %v377_v9 }
  0xa5   :  { %86 = vperm.xlu0 %316, %v383_v10  }
  0xfc   :  { %v398_v15 = vpop.xlane.xlu0 %104 }
  0xfd   :  { %vm108_vm2 = vcmp.eq.f32.partialorder %v373_v7, %v398_v15  ;;  %v142_v16 = vmax.f32 %v394_v13, %v398_v15  ;;  %vm178_vm3 = vcmp.gt.f32.partialorder %v398_v15, %v394_v13 }
  0xfe   :  { %v110_v17 = vsel %vm108_vm2, %v396_v14, 1073741824 }
  0xff   :  { %v146_v18 = vsub.f32 %v394_v13, %v142_v16  ;;  %186 = vst.msk [vmem:[#allocation2] sm:$0xff] %vm22_vm1, %v142_v16  ;;  %156 = vperm.xlu1 %315, %v142_v16   ;;  %v113_v19 = vshra.s32 %v110_v17, 16  ;;  %v112_v37 = vand.u32 65535, %v110_v17 }
 0x101   :  { %v115_v20 = vcvt.s32.f32 %v113_v19  ;;  %v114_v38 = vcvt.s32.f32 %v112_v37  ;;  %v148_v49 = vmul.f32 1.442695, %v146_v18  ;;  %v83_v18 = vld [vmem:[#allocation4] sm:$0xff] }
 0x103   :  { %116 = vmin.xlane.f32.xlu2 %v115_v20 }
 0x104   :  { %v411_v22 = vpop.xlane.xlu0 %106 }
 0x105   :  { %vm109_vm4 = vcmp.eq.f32.partialorder %v377_v9, %v411_v22  ;;  %v143_v23 = vmax.f32 %v409_v21, %v411_v22  ;;  %vm179_vm5 = vcmp.gt.f32.partialorder %v411_v22, %v409_v21 }
 0x106   :  { %v111_v24 = vsel %vm109_vm4, %v396_v14, 1073741824  ;;  %v204_v37 = vld [vmem:[#allocation2] sm:$0xff] }
 0x107   :  { %v147_v25 = vsub.f32 %v409_v21, %v143_v23  ;;  %187 = vst.msk [vmem:[#allocation2 + $0x8] sm:$0xff] %vm22_vm1, %v143_v23  ;;  %161 = vperm.xlu1 %315, %v143_v23   ;;  %v127_v26 = vshra.s32 %v111_v24, 16  ;;  %v126_v42 = vand.u32 65535, %v111_v24  ;;  %v84_v23 = vld [vmem:[#allocation4 + $0x8] sm:$0xff] }
 0x109   :  { %v129_v27 = vcvt.s32.f32 %v127_v26  ;;  %v128_v43 = vcvt.s32.f32 %v126_v42  ;;  %v150_v50 = vmul.f32 1.442695, %v147_v25 }
 0x10b   :  { %130 = vmin.xlane.f32.xlu2 %v129_v27 }
 0x10f   :  { %89 = vperm.xlu1 %315, %v425_v28  }
 0x117   :  { %v87_v45 = vpop.permute.xlu0 %86 }
 0x118   :  { %vm91_vm8 = vcmp.eq.s32.totalorder %v396_v14, %v87_v45  ;;  %v205_v45 = vld [vmem:[#allocation2 + $0x8] sm:$0xff] }
 0x119   :  { %v93_v46 = vsel %vm91_vm8, %v373_v7, 0.0 }
 0x171   :  { %v157_v29 = vpop.permute.xlu1 %156 }
 0x172   :  { %v164_v30 = vsub.f32 %v373_v7, %v157_v29 }
 0x174   :  { %v166_v31 = vmul.f32 1.442695, %v164_v30 }
 0x176   :  { %318 = vpow2.f32 %v166_v31  ;;  %v117_v35 = vpop.xlane.xlu2 %116 }
 0x177   :  { %vm118_vm6 = vcmp.eq.f32.partialorder %v115_v20, %v117_v35  ;;  %v123_v58 = vcvt.f32.s32 %v117_v35  ;;  %v301_v35 = vsel %vm200_vm11, 1.0, %v332_v11 }
 0x178   :  { %v119_v40 = vsel %vm118_vm6, %v114_v38, inf }
 0x179   :  { %v162_v32 = vpop.permute.xlu1 %161  ;;  %v124_v62 = vshll.u32 %v123_v58, 16 }
 0x17a   :  { %v165_v33 = vsub.f32 %v377_v9, %v162_v32 }
 0x17c   :  { %v319_v34 = vpop.eup %318  ;;  %v168_v36 = vmul.f32 1.442695, %v165_v33 }
 0x17d   :  { %170 = vadd.xlane.f32.xlu2 %v319_v34 }
 0x17e   :  { %320 = vpow2.f32 %v168_v36  ;;  %v131_v41 = vpop.xlane.xlu2 %130  ;;  %v302_v36 = vsel %vm201_vm12, 1.0, %v332_v11 }
 0x17f   :  { %vm132_vm7 = vcmp.eq.f32.partialorder %v129_v27, %v131_v41  ;;  %322 = vpow2.f32 %v148_v49  ;;  %v137_v3 = vcvt.f32.s32 %v131_v41 }
 0x180   :  { %v133_v44 = vsel %vm132_vm7, %v128_v43, inf  ;;  %324 = vpow2.f32 %v150_v50 }
 0x181   :  { %v90_v47 = vpop.permute.xlu1 %89  ;;  %v138_v6 = vshll.u32 %v137_v3, 16 }
 0x182   :  { %vm92_vm9 = vcmp.eq.s32.totalorder %v396_v14, %v90_v47 }
 0x183   :  { %v94_v48 = vsel %vm92_vm9, %v377_v9, 0.0 }
 0x184   :  { %v321_v39 = vpop.eup %320 }
 0x185   :  { %172 = vadd.xlane.f32.xlu1 %v321_v39  ;;  %120 = vmin.xlane.f32.xlu2 %v119_v40  ;;  %v323_v51 = vpop.eup %322  ;;  %v258_v39 = vsel %vm22_vm1, %v301_v35, 0.0  ;;  %v259_v40 = vsel %vm22_vm1, %v302_v36, 0.0 }
 0x186   :  { %v152_v53 = vmul.f32 %v323_v51, %v144_v52  ;;  %v325_v56 = vpop.eup %324 }
 0x187   :  { %v153_v59 = vmul.f32 %v325_v56, %v145_v57 }
 0x18d   :  { %134 = vmin.xlane.f32.xlu2 %v133_v44  ;;  %v260_v44 = vadd.f32 %v259_v40, %v258_v39 }
 0x195   :  { %95 = vadd.xlane.f32.xlu2 %v93_v46 }
 0x19d   :  { %97 = vadd.xlane.f32.xlu2 %v94_v48 }
 0x1f0   :  { %v171_v54 = vpop.xlane.xlu2 %170 }
 0x1f1   :  { %v174_v55 = vadd.f32 %v171_v54, %v152_v53 }
 0x1f3   :  { %176 = vst.msk [vmem:[#allocation3] sm:$0xff] %vm22_vm1, %v174_v55 }
 0x1f8   :  { %v173_v60 = vpop.xlane.xlu1 %172  ;;  %v121_v61 = vpop.xlane.xlu2 %120 }
 0x1f9   :  { %v175_v63 = vadd.f32 %v173_v60, %v153_v59  ;;  %v122_v0 = vcvt.f32.s32 %v121_v61 }
 0x1fa   :  { %v206_v17 = vld [vmem:[#allocation3] sm:$0xff] }
 0x1fb   :  { %177 = vst.msk [vmem:[#allocation3 + $0x8] sm:$0xff] %vm22_vm1, %v175_v63  ;;  %v125_v2 = vadd.s32 %v124_v62, %v122_v0  ;;  %326 = vlog2.f32 %v206_v17 }
 0x1fd   :  { %v182_v4 = vsel %vm178_vm3, %v125_v2, %v180_v1 }
 0x1fe   :  { %184 = vst.msk [vmem:[#allocation5] sm:$0xff] %vm22_vm1, %v182_v4 }
 0x200   :  { %v135_v5 = vpop.xlane.xlu2 %134 }
 0x201   :  { %v136_v7 = vcvt.f32.s32 %v135_v5  ;;  %v327_v22 = vpop.eup %326 }
 0x202   :  { %v207_v15 = vld [vmem:[#allocation3 + $0x8] sm:$0xff]  ;;  %v209_v32 = vmul.f32 0.6931472, %v327_v22 }
 0x203   :  { %v139_v9 = vadd.s32 %v138_v6, %v136_v7  ;;  %328 = vlog2.f32 %v207_v15 }
 0x204   :  { %v212_v42 = vadd.f32 %v209_v32, %v204_v37 }
 0x205   :  { %v183_v12 = vsel %vm179_vm5, %v139_v9, %v181_v8  ;;  %v218_v16 = vld [vmem:[#allocation5] sm:$0xff] }
 0x206   :  { %185 = vst.msk [vmem:[#allocation5 + $0x8] sm:$0xff] %vm22_vm1, %v183_v12  ;;  %vm220_vm10 = vcmp.eq.s32.totalorder %v218_v16, %v383_v10 }
 0x207   :  { %v299_v20 = vsel %vm220_vm10, 1.0, %v332_v11 }
 0x208   :  { %v96_v19 = vpop.xlane.xlu2 %95  ;;  %v240_v24 = vsel %vm200_vm11, %v299_v20, 0.0 }
 0x209   :  { %v99_v13 = vadd.f32 %v96_v19, %v83_v18  ;;  %v242_v30 = vsel %vm22_vm1, %v240_v24, 0.0  ;;  %v329_v33 = vpop.eup %328 }
 0x20a   :  { %v211_v41 = vmul.f32 0.6931472, %v329_v33 }
 0x20b   :  { %102 = vst.msk [vmem:[#allocation4] sm:$0xff] %vm22_vm1, %v99_v13 }
 0x20c   :  { %v213_v46 = vadd.f32 %v211_v41, %v205_v45 }
 0x20d   :  { %v219_v21 = vld [vmem:[#allocation5 + $0x8] sm:$0xff] }
 0x20e   :  { %vm221_vm13 = vcmp.eq.s32.totalorder %v219_v21, %v425_v28 }
 0x20f   :  { %v300_v25 = vsel %vm221_vm13, 1.0, %v332_v11 }
 0x210   :  { %v98_v26 = vpop.xlane.xlu2 %97  ;;  %v241_v27 = vsel %vm201_vm12, %v300_v25, 0.0 }
 0x211   :  { %v100_v29 = vadd.f32 %v98_v26, %v84_v23  ;;  %v243_v31 = vsel %vm22_vm1, %v241_v27, 0.0 }
 0x212   :  { %v244_v34 = vadd.f32 %v243_v31, %v242_v30  ;;  %v214_v38 = vld [vmem:[#allocation4] sm:$0xff] }
 0x213   :  { %103 = vst.msk [vmem:[#allocation4 + $0x8] sm:$0xff] %vm22_vm1, %v100_v29  ;;  %v216_v43 = vsub.f32 %v212_v42, %v214_v38 }
 0x214   :  { %245 = vadd.xlane.f32.xlu2 %v244_v34 }
 0x215   :  { %v226_v11 = vsel %vm200_vm11, %v216_v43, 0.0 }
 0x216   :  { %v228_v50 = vsel %vm22_vm1, %v226_v11, 0.0 }
 0x21a   :  { %v215_v47 = vld [vmem:[#allocation4 + $0x8] sm:$0xff] }
 0x21b   :  { %v217_v48 = vsub.f32 %v213_v46, %v215_v47 }
 0x21c   :  { %261 = vadd.xlane.f32.xlu2 %v260_v44 }
 0x21d   :  { %v227_v49 = vsel %vm201_vm12, %v217_v48, 0.0 }
 0x21e   :  { %v229_v51 = vsel %vm22_vm1, %v227_v49, 0.0 }
 0x21f   :  { %v230_v52 = vadd.f32 %v229_v51, %v228_v50 }
 0x221   :  { %231 = vadd.xlane.f32.xlu0 %v230_v52 }
 0x287   :  { %v246_v53 = vpop.xlane.xlu2 %245 }
 0x288   :  { %v247_v54 = vrot.slane %v246_v53, 4 }
 0x28a   :  { %v248_v56 = vadd.f32 %v247_v54, %v246_v53 }
 0x28c   :  { %v249_v59 = vrot.slane %v248_v56, 2 }
 0x28e   :  { %v250_v63 = vadd.f32 %v249_v59, %v248_v56 }
 0x28f   :  { %v262_v55 = vpop.xlane.xlu2 %261 }
 0x290   :  { %v263_v57 = vrot.slane %v262_v55, 4  ;;  %v251_v2 = vrot.slane %v250_v63, 1 }
 0x292   :  { %v264_v58 = vadd.f32 %v263_v57, %v262_v55  ;;  %v252_v6 = vadd.f32 %v251_v2, %v250_v63 }
 0x294   :  { %v232_v60 = vpop.xlane.xlu0 %231  ;;  %v265_v10 = vrot.slane %v264_v58, 2 }
 0x295   :  { %v233_v61 = vrot.slane %v232_v60, 4 }
 0x296   :  { %v266_v28 = vadd.f32 %v265_v10, %v264_v58 }
 0x297   :  { %v234_v62 = vadd.f32 %v233_v61, %v232_v60 }
 0x298   :  { %v267_v4 = vrot.slane %v266_v28, 1 }
 0x299   :  { %v235_v0 = vrot.slane %v234_v62, 2 }
 0x29a   :  { %v268_v7 = vadd.f32 %v267_v4, %v266_v28 }
 0x29b   :  { %v236_v1 = vadd.f32 %v235_v0, %v234_v62 }
 0x29d   :  { %v237_v3 = vrot.slane %v236_v1, 1 }
 0x29f   :  { %v238_v5 = vadd.f32 %v237_v3, %v236_v1 }
 0x2a1   :  { %306 = vpush %v238_v5 }
 0x2a2   :  { %308 = vpush %v252_v6 }
 0x2a3   :  { %310 = vpush %v268_v7 }
 0x2d2   :  { %s307_s3 = spop %306 }
 0x2d3   :  { %v271_v8 = vstv %s307_s3  ;;  %s309_s24 = spop %308 }
 0x2d4   :  { %v272_v9 = vsel %vm270_vm14, %v271_v8, 0.0  ;;  %v274_v12 = vstv %s309_s24  ;;  %s311_s25 = spop %310 }
 0x2d5   :  { %v275_v16 = vsel %vm273_vm15, %v274_v12, 0.0  ;;  %v278_v17 = vstv %s311_s25 }
 0x2d6   :  { %v276_v18 = vadd.f32 %v275_v16, %v272_v9  ;;  %v279_v19 = vsel %vm277_vm0, %v278_v17, 0.0 }
 0x2d8   :  { %v280_v13 = vadd.f32 %v279_v19, %v276_v18 }
 0x2da   :  { %281 = vst [vmem:[%s482_s4] sm:$0xff] %v280_v13 }

</bundles_post_ra>
